<compile_context>
chip_gen: v6e
topology: v6e:2x2x1
jax: 0.10.0
libtpu: 0.0.40
codegen_flags: <defaults>
</compile_context>

<pallas_src>
import functools

import jax
import jax.numpy as jnp
from jax.experimental import pallas as pl
from jax.experimental.pallas import tpu as pltpu

LANE = 128
SUBLANE = 8
_MIB = 1 << 20


def _round_up(x, m):
    return (x + m - 1) // m * m


def classifier_kernel(x_ref, w1_ref, b1_ref, w2_ref, b2_ref, o_ref):
    # x is streamed f32; cast to bf16 only at the MXU boundary (in-kernel, so
    # no extra HBM pass creating a converted copy of x).
    xb = x_ref[...].astype(jnp.bfloat16)
    # linear1 on MXU, f32 accumulate.
    h = jnp.dot(xb, w1_ref[...], preferred_element_type=jnp.float32)
    # bias add + ReLU in f32 on the VPU (v5e-safe: no bf16 VPU math).
    h = jnp.maximum(h + b1_ref[...], 0.0)
    # dropout: eval-mode identity.
    # linear2: downcast hidden to bf16 only at the MXU boundary.
    out = jnp.dot(h.astype(jnp.bfloat16), w2_ref[...],
                  preferred_element_type=jnp.float32)
    o_ref[...] = (out + b2_ref[...]).astype(o_ref.dtype)


def pack_classifier_params(w1, b1, w2, b2):
    """One-time weight packing (call once, reuse for every forward).

    Takes PyTorch-layout params:
      w1: (H, In), b1: (H,), w2: (C, H), b2: (C,)
    Returns pre-transposed, bf16, lane-padded tensors:
      w1_p: (In, Hp) bf16, b1_p: (1, Hp) f32, w2_p: (Hp, Cp) bf16, b2_p: (1, Cp) f32
    Zero padding keeps padded lanes inert through ReLU and matmul2.
    """
    H, In = w1.shape
    C = w2.shape[0]
    Hp = _round_up(H, LANE)
    Cp = _round_up(C, LANE)
    w1_p = jnp.pad(jnp.asarray(w1).T.astype(jnp.bfloat16), ((0, 0), (0, Hp - H)))
    b1_p = jnp.pad(jnp.asarray(b1, jnp.float32).reshape(1, H),
                   ((0, 0), (0, Hp - H)))
    w2_p = jnp.pad(jnp.asarray(w2).T.astype(jnp.bfloat16),
                   ((0, Hp - H), (0, Cp - C)))
    b2_p = jnp.pad(jnp.asarray(b2, jnp.float32).reshape(1, C),
                   ((0, 0), (0, Cp - C)))
    return w1_p, b1_p, w2_p, b2_p


def _select_tile_b(B, In, Hp, Cp, out_itemsize, vmem_budget_bytes):
    """Largest batch tile fitting a VMEM budget; >=2 grid steps when B allows."""
    # Resident (single-buffered) bf16 weights + f32 biases.
    resident = In * Hp * 2 + Hp * Cp * 2 + Hp * 4 + Cp * 4
    # Per-row streamed/scratch bytes: 2x f32 x tile, 2x out tile, f32 hidden.
    per_row = 2 * In * 4 + 2 * Cp * out_itemsize + Hp * 4
    avail = max(vmem_budget_bytes - resident, SUBLANE * per_row)
    tile = max(SUBLANE, (avail // per_row) // SUBLANE * SUBLANE)
    tile = min(tile, 2048)                      # diminishing returns past ~1-2k rows
    tile = min(tile, _round_up(B, SUBLANE))
    if B > SUBLANE:                             # allow >=2 grid steps (v7x 2 TCs)
        tile = min(tile, _round_up(pl.cdiv(B, 2), SUBLANE))
    return tile


@functools.partial(jax.jit, static_argnames=("num_classes", "out_dtype", "tile_b"))
def classifier_forward(x, w1_p, b1_p, w2_p, b2_p, *, num_classes,
                       out_dtype=jnp.float32, tile_b=None):
    """Fused linear1 -> relu -> (dropout eval) -> linear2.

    x: (B, In) float32; packed params from pack_classifier_params().
    Returns (B, num_classes) in out_dtype.
    """
    B, In = x.shape
    Hp = w1_p.shape[1]
    Cp = w2_p.shape[1]
    out_itemsize = jnp.dtype(out_dtype).itemsize

    TILE_B = tile_b if tile_b is not None else _select_tile_b(
        B, In, Hp, Cp, out_itemsize, vmem_budget_bytes=40 * _MIB)
    grid = (pl.cdiv(B, TILE_B),)

    # VMEM actually used: resident weights (1x), double-buffered x/out tiles,
    # f32 hidden scratch; plus headroom.  Capped below v7x's 64 MiB physical.
    need = (w1_p.size * 2 + w2_p.size * 2 + b1_p.size * 4 + b2_p.size * 4
            + 2 * TILE_B * In * 4 + 2 * TILE_B * Cp * out_itemsize
            + TILE_B * Hp * 4)
    vmem_limit = int(min(48 * _MIB, max(16 * _MIB, need + 4 * _MIB)))

    cost = pl.CostEstimate(
        flops=2 * B * (In * Hp + Hp * Cp),
        transcendentals=0,
        bytes_accessed=(B * In * 4 + w1_p.size * 2 + w2_p.size * 2
                        + b1_p.size * 4 + b2_p.size * 4 + B * Cp * out_itemsize),
    )

    # Constant-index operands stay VMEM-resident; single-buffer them.
    resident_spec = functools.partial(pl.BlockSpec, pipeline_mode=pl.Buffered(1))

    out_padded = pl.pallas_call(
        classifier_kernel,
        out_shape=jax.ShapeDtypeStruct((B, Cp), out_dtype),
        grid=grid,
        in_specs=[
            # x streams per batch tile (ragged last tile handled by Pallas).
            pl.BlockSpec((TILE_B, In), lambda i: (i, 0)),
            resident_spec((In, Hp), lambda i: (0, 0)),
            resident_spec((1, Hp), lambda i: (0, 0)),
            resident_spec((Hp, Cp), lambda i: (0, 0)),
            resident_spec((1, Cp), lambda i: (0, 0)),
        ],
        out_specs=pl.BlockSpec((TILE_B, Cp), lambda i: (i, 0)),
        compiler_params=pltpu.CompilerParams(
            dimension_semantics=("parallel",),
            vmem_limit_bytes=vmem_limit,
        ),
        cost_estimate=cost,
    )(x, w1_p, b1_p, w2_p, b2_p)

    return out_padded[:, :num_classes]


def init_linear_params(key, in_features, out_features):
    """Deterministic init mimicking torch.nn.Linear (uniform +/- 1/sqrt(in)),
    in PyTorch layout: weight (out, in), bias (out,)."""
    kw, kb = jax.random.split(key)
    bound = 1.0 / jnp.sqrt(jnp.float32(in_features))
    w = jax.random.uniform(kw, (out_features, in_features), dtype=jnp.float32,
                           minval=-bound, maxval=bound)
    b = jax.random.uniform(kb, (out_features,), dtype=jnp.float32,
                           minval=-bound, maxval=bound)
    return w, b


if __name__ == "__main__":
    # Small shapes implied by the module: (batch, input_size) -> num_classes.
    # batch=10 deliberately not a multiple of the tile to exercise the masked
    # ragged last tile.
    batch, input_size, hidden_size, num_classes = 10, 32, 64, 16

    key = jax.random.PRNGKey(0)
    kx, k1, k2 = jax.random.split(key, 3)

    x = jax.random.normal(kx, (batch, input_size), dtype=jnp.float32)
    w1, b1 = init_linear_params(k1, input_size, hidden_size)
    w2, b2 = init_linear_params(k2, hidden_size, num_classes)

    # One-time weight packing, hoisted out of the per-call path.
    packed = pack_classifier_params(w1, b1, w2, b2)
    packed = jax.block_until_ready(packed)

    out = classifier_forward(x, *packed, num_classes=num_classes)
    out = jax.block_until_ready(out)

    # Pure-JAX reference matching kernel numerics: bf16 MXU operands, f32
    # accumulation / elementwise (eval-mode dropout == identity).
    f32 = jnp.float32
    hi = jax.lax.Precision.HIGHEST
    xb = x.astype(jnp.bfloat16).astype(f32)
    w1b = w1.T.astype(jnp.bfloat16).astype(f32)
    w2b = w2.T.astype(jnp.bfloat16).astype(f32)
    h_ref = jnp.maximum(jnp.dot(xb, w1b, precision=hi) + b1[None, :], 0.0)
    ref = jnp.dot(h_ref.astype(jnp.bfloat16).astype(f32), w2b,
                  precision=hi) + b2[None, :]

    assert out.shape == (batch, num_classes)
    assert jnp.allclose(out, ref, atol=2e-3, rtol=2e-3), (
        float(jnp.max(jnp.abs(out - ref))))

    print("KERNEL_OK")
</pallas_src>

<mosaic_0001>
module attributes {stable_mosaic.version = 11 : i64} {
  func.func @classifier_kernel(%arg0: i32, %arg1: memref<8x32xf32, #tpu.memory_space<vmem>>, %arg2: memref<32x128xbf16, #tpu.memory_space<vmem>>, %arg3: memref<1x128xf32, #tpu.memory_space<vmem>>, %arg4: memref<128x128xbf16, #tpu.memory_space<vmem>>, %arg5: memref<1x128xf32, #tpu.memory_space<vmem>>, %arg6: memref<8x128xf32, #tpu.memory_space<vmem>>) attributes {dimension_semantics = [#tpu.dimension_semantics<parallel>], iteration_bounds = array<i64: 2>, scalar_prefetch = 0 : i64, scratch_operands = 0 : i64, tpu.core_type = #tpu.core_type<tc>, window_params = [{transform_indices = @transform_0, window_bounds = array<i64: 8, 32>}, {pipeline_mode = #tpu.pipeline_mode<synchronous>, transform_indices = @transform_1, window_bounds = array<i64: 32, 128>}, {pipeline_mode = #tpu.pipeline_mode<synchronous>, transform_indices = @transform_2, window_bounds = array<i64: 1, 128>}, {pipeline_mode = #tpu.pipeline_mode<synchronous>, transform_indices = @transform_3, window_bounds = array<i64: 128, 128>}, {pipeline_mode = #tpu.pipeline_mode<synchronous>, transform_indices = @transform_4, window_bounds = array<i64: 1, 128>}, {transform_indices = @transform_5, window_bounds = array<i64: 8, 128>}]} {
    %c0 = arith.constant 0 : index
    %c0_0 = arith.constant 0 : index
    %0 = vector.load %arg1[%c0, %c0_0] : memref<8x32xf32, #tpu.memory_space<vmem>>, vector<8x32xf32>
    %1 = arith.truncf %0 : vector<8x32xf32> to vector<8x32xbf16>
    %c0_1 = arith.constant 0 : index
    %c0_2 = arith.constant 0 : index
    %2 = vector.load %arg2[%c0_1, %c0_2] : memref<32x128xbf16, #tpu.memory_space<vmem>>, vector<32x128xbf16>
    %cst = arith.constant dense<0.000000e+00> : vector<8x128xf32>
    %3 = tpu.matmul %1, %2, %cst {dimension_numbers = #tpu.dot_dimension_numbers<[1], [0], [0], [1], [0, 0, 1, 1], [], []>} : vector<8x32xbf16>, vector<32x128xbf16>, vector<8x128xf32> -> vector<8x128xf32>
    %c0_3 = arith.constant 0 : index
    %c0_4 = arith.constant 0 : index
    %4 = vector.load %arg3[%c0_3, %c0_4] : memref<1x128xf32, #tpu.memory_space<vmem>>, vector<1x128xf32>
    %5 = vector.broadcast %4 : vector<1x128xf32> to vector<8x128xf32>
    %6 = arith.addf %3, %5 : vector<8x128xf32>
    %cst_5 = arith.constant 0.000000e+00 : f32
    %7 = vector.broadcast %cst_5 : f32 to vector<8x128xf32>
    %8 = arith.maximumf %6, %7 : vector<8x128xf32>
    %9 = arith.truncf %8 : vector<8x128xf32> to vector<8x128xbf16>
    %c0_6 = arith.constant 0 : index
    %c0_7 = arith.constant 0 : index
    %10 = vector.load %arg4[%c0_6, %c0_7] : memref<128x128xbf16, #tpu.memory_space<vmem>>, vector<128x128xbf16>
    %cst_8 = arith.constant dense<0.000000e+00> : vector<8x128xf32>
    %11 = tpu.matmul %9, %10, %cst_8 {dimension_numbers = #tpu.dot_dimension_numbers<[1], [0], [0], [1], [0, 0, 1, 1], [], []>} : vector<8x128xbf16>, vector<128x128xbf16>, vector<8x128xf32> -> vector<8x128xf32>
    %c0_9 = arith.constant 0 : index
    %c0_10 = arith.constant 0 : index
    %12 = vector.load %arg5[%c0_9, %c0_10] : memref<1x128xf32, #tpu.memory_space<vmem>>, vector<1x128xf32>
    %13 = vector.broadcast %12 : vector<1x128xf32> to vector<8x128xf32>
    %14 = arith.addf %11, %13 : vector<8x128xf32>
    %c0_11 = arith.constant 0 : index
    %c0_12 = arith.constant 0 : index
    %15 = vector.load %arg6[%c0_11, %c0_12] : memref<8x128xf32, #tpu.memory_space<vmem>>, vector<8x128xf32>
    tpu.vector_store %arg6[%c0_11, %c0_12], %14 {strides = array<i32>} : memref<8x128xf32, #tpu.memory_space<vmem>>, vector<8x128xf32>,
    return
  }
  func.func @transform_0(%arg0: i32) -> (i32, i32) {
    %c0_i32 = arith.constant 0 : i32
    %c0_i32_0 = arith.constant 0 : i32
    return %arg0, %c0_i32 : i32, i32
  }
  func.func @transform_1(%arg0: i32) -> (i32, i32) {
    %c0_i32 = arith.constant 0 : i32
    %c0_i32_0 = arith.constant 0 : i32
    %c0_i32_1 = arith.constant 0 : i32
    return %c0_i32, %c0_i32_0 : i32, i32
  }
  func.func @transform_2(%arg0: i32) -> (i32, i32) {
    %c0_i32 = arith.constant 0 : i32
    %c0_i32_0 = arith.constant 0 : i32
    %c0_i32_1 = arith.constant 0 : i32
    return %c0_i32, %c0_i32_0 : i32, i32
  }
  func.func @transform_3(%arg0: i32) -> (i32, i32) {
    %c0_i32 = arith.constant 0 : i32
    %c0_i32_0 = arith.constant 0 : i32
    %c0_i32_1 = arith.constant 0 : i32
    return %c0_i32, %c0_i32_0 : i32, i32
  }
  func.func @transform_4(%arg0: i32) -> (i32, i32) {
    %c0_i32 = arith.constant 0 : i32
    %c0_i32_0 = arith.constant 0 : i32
    %c0_i32_1 = arith.constant 0 : i32
    return %c0_i32, %c0_i32_0 : i32, i32
  }
  func.func @transform_5(%arg0: i32) -> (i32, i32) {
    %c0_i32 = arith.constant 0 : i32
    %c0_i32_0 = arith.constant 0 : i32
    return %arg0, %c0_i32 : i32, i32
  }
}

</mosaic_0001>

<bundles_post_ra>
// kernel: classifier_forward.1
= control target key start
LH: loop header
LB: loop body
LE: loop exit
PB: predicated region body
PF: predicated region fallthrough
CT: control target
= control target key end

     0   :  { %10 = vsyncpa [#allocation3], 0  ;;  %s1081_s0 = inlined_call_operand.hbm [shape: f32[10,32], index: 0, kind: input, shape index: {}]   ;;  %s1082_s1 = inlined_call_operand.hbm [shape: bf16[32,128], index: 1, kind: input, shape index: {}]   ;;  %s1083_s2 = inlined_call_operand.vmem [shape: f32[1,128], index: 2, kind: input, shape index: {}]   ;;  %s1084_s3 = inlined_call_operand.hbm [shape: bf16[128,128], index: 3, kind: input, shape index: {}]   ;;  %s1085_s4 = inlined_call_operand.vmem [shape: f32[1,128], index: 4, kind: input, shape index: {}]   ;;  %s1086_s5 = inlined_call_operand.hbm [shape: f32[10,128], index: 5, kind: output, shape index: {}]  }
   0x1   :  { %12 = vsyncpa [#allocation3 + $0x1], 0 }
   0x2   :  { %13 = vsyncpa [#allocation6], 0 }
   0x3   :  { %14 = vsyncpa [#allocation4], 0 }
   0x4   :  { %16 = vsyncpa [#allocation4 + $0x1], 0  ;;  %s894_s18 = smov 0   ;;  %s896_s19 = smov 0  }
   0x5   :  { %s898_s20 = smov 0   ;;  %s900_s21 = smov 0  }
   0x6 LB: > { %s915_s22 = sadd.s32 4294967295, %s854_s21   ;;  %s556_s23 = sadd.s32 4294967294, %s854_s21   ;;  %s854_s21 = sphi %s900_s21, %s1108_s21   ;;  %s850_s20 = sphi %s898_s20, %s1107_s20   ;;  %s846_s19 = sphi %s896_s19, %s1106_s19   ;;  %s842_s18 = sphi %s894_s18, %s1105_s18  }
   0x7   : > { %p42_p0 = scmp.ne.s32.totalorder %s846_s19, %s842_s18  ;;  %p1087_p1 = scmp.eq.s32.totalorder %s915_s22, 0 }
   0x8   : > { %p156_p3 = scmp.eq.s32.totalorder %s556_s23, 1  ;;  %p557_p5 = scmp.ge.s32.totalorder %s854_s21, 1 }
   0x9   : > { %p924_p4 = por %p1087_p1, %p42_p0  ;;  %p163_p7 = scmp.lt.s32.totalorder %s854_s21, 3 }
   0xa   : > { %p929_p6 = por %p156_p3, %p42_p0  ;;  %s856_s27 = smov [#allocation5]  }
   0xb   : > { %s1091_s24 = scalar_select %p924_p4, 1, 0 }
   0xc   : > { %s1092_s25 = scalar_select %p929_p6, 1, 0 }
   0xd   : > { %p934_p8 = pnand %p557_p5, %p163_p7  ;;  %s175_s28 = sshll.u32 %s856_s27, 4  ;;  %s176_s28 = int_to_ptr.vmem [resolvable:$true] %s175_s28 }
   0xe   : > { %s857_s30 = smov [#allocation7]   ;;  %s717_s7 = scalar_lea.vmem %s176_s28, 256 }
   0xf   : > { %s1093_s26 = scalar_select %p934_p8, 1, 0 }
  0x10   : > { %p637_p9 = pneg %p934_p8  ;;  %s191_s6 = sshll.u32 %s857_s30, 4  ;;  %s192_s6 = int_to_ptr.vmem [resolvable:$true] %s191_s6 }
  0x11   : > { %p718_p13 = scmp.ne.s32.totalorder %s176_s28, %s717_s7  ;;  %p725_p5 = scmp.lt.s32.totalorder %s176_s28, %s176_s28 }
  0x12   : > { %p943_p11 = pnand %p637_p9, %p1087_p1  ;;  %p726_p7 = scmp.lt.s32.totalorder %s717_s7, %s717_s7 }
  0x14   : > { %p708_p12 = pneg %p943_p11  ;;  %p727_p10 = por %p726_p7, %p725_p5 }
  0x16   : > { %p720_p0 = pnand %p718_p13, %p708_p12 }
  0x18   : > { %p721_p3 = pneg %p720_p0 }
  0x1a   : > { %p728_p9 = pnand %p727_p10, %p721_p3 }
  0x1c   : > { %731 = shalt.err (!%p728_p9)
}
  0x1d   : > { %s858_s8 = smov 64   ;;  %s859_s9 = smov 4  }
  0x1e   : > { %640 = dma.hbm_to_vmem [thread:$0]  (!%p943_p11), %s1082_s1, 256, %s176_s28, [#allocation6], %s858_s8, %s858_s8, %s859_s9  }
  0x1f   : > { %s743_s12 = scalar_lea.vmem %s192_s6, 1024  ;;  %p751_p2 = scmp.lt.s32.totalorder %s192_s6, %s192_s6 }
  0x20   : > { %p744_p1 = scmp.ne.s32.totalorder %s192_s6, %s743_s12  ;;  %p752_p6 = scmp.lt.s32.totalorder %s743_s12, %s743_s12 }
  0x22   : > { %p746_p13 = pnand %p744_p1, %p708_p12  ;;  %p753_p5 = por %p752_p6, %p751_p2 }
  0x24   : > { %p747_p0 = pneg %p746_p13 }
  0x26   : > { %p754_p10 = pnand %p753_p5, %p747_p0 }
  0x28   : > { %757 = shalt.err (!%p754_p10)
}
  0x29   : > { %643 = dma.hbm_to_vmem [thread:$0]  (!%p943_p11), %s1084_s3, 1024, %s192_s6, [#allocation6], %s858_s8, %s858_s8, %s859_s9  }
  0x2a   : > { %s966_s15 = sadd.s32 1, %s854_s21   ;;  %s29_s16 = sadd.s32 1, %s850_s20 }
  0x2b   : > { %s26_s17 = ssub.s32 %s854_s21, %s966_s15  ;;  %p36_p1 = scmp.ne.s32.totalorder %s850_s20, %s846_s19 }
  0x2c   : > { %p27_p2 = scmp.eq.s32.totalorder %s26_s17, 0  ;;  %p37_p6 = scmp.eq.s32.totalorder %s854_s21, 0 }
  0x2d   : > { %p1095_p12 = scmp.eq.s32.totalorder %s915_s22, 1  ;;  %p654_p7 = scmp.lt.s32.totalorder %s854_s21, 2 }
  0x2e   : > { %s982_s27 = scalar_select %p27_p2, %s850_s20, %s29_s16  }
  0x2f   : > { %p976_p3 = por %p1095_p12, %p36_p1  ;;  %p38_p9 = por %p37_p6, %p36_p1 }
  0x30   : > { %s208_s28 = sand.u32 1, %s850_s20   ;;  %s562_s30 = sshll.u32 %s854_s21, 7 }
  0x31   : > { %s1096_s23 = scalar_select %p976_p3, 1, 0 }
  0x32   : > { %s561_s29 = sshll.u32 %s208_s28, 3  ;;  %s989_s8 = scalar_lea.hbm %s1081_s0, %s562_s30 }
  0x33   : > { %s212_s9 = scalar_lea.vmem [#allocation2], %s561_s29  ;;  %p991_p11 = pnand %p654_p7, %p38_p9 }
  0x34   : > { %s219_s10 = sshll.u32 %s212_s9, 4  ;;  %s209_s12 = scalar_lea.sflag [#allocation3], %s208_s28  ;;  %s220_s10 = int_to_ptr.vmem [resolvable:$true] %s219_s10 }
  0x35   : > { %s758_s13 = scalar_lea.hbm %s989_s8, 128  ;;  %p760_p0 = pneg %p991_p11 }
  0x36   : > { %p759_p13 = scmp.ne.s32.totalorder %s989_s8, %s758_s13  ;;  %s763_s17 = scalar_lea.hbm %s1081_s0, 256 }
  0x37   : > { %p764_p1 = scmp.lt.s32.totalorder %s989_s8, %s1081_s0  ;;  %p765_p2 = scmp.lt.s32.totalorder %s763_s17, %s758_s13 }
  0x38   : > { %p761_p5 = pnand %p760_p0, %p759_p13 }
  0x39   : > { %p766_p6 = por %p765_p2, %p764_p1 }
  0x3a   : > { %p762_p10 = pneg %p761_p5 }
  0x3c   : > { %p767_p12 = pnand %p766_p6, %p762_p10 }
  0x3e   : > { %770 = shalt.err (!%p767_p12)
}
  0x3f   : > { %s771_s6 = scalar_lea.vmem %s220_s10, 128  ;;  %s860_s28 = smov [#allocation2]  }
  0x40   : > { %p772_p7 = scmp.ne.s32.totalorder %s220_s10, %s771_s6  ;;  %s776_s7 = sshll.u32 %s860_s28, 4  ;;  %s777_s7 = int_to_ptr.vmem [resolvable:$false] %s776_s7 }
  0x41   : > { %s778_s9 = scalar_lea.vmem %s777_s7, 256  ;;  %p779_p13 = scmp.lt.s32.totalorder %s220_s10, %s777_s7 }
  0x42   : > { %p774_p9 = pnand %p772_p7, %p760_p0  ;;  %p780_p5 = scmp.lt.s32.totalorder %s778_s9, %s771_s6 }
  0x44   : > { %p775_p3 = pneg %p774_p9  ;;  %p781_p4 = por %p780_p5, %p779_p13 }
  0x46   : > { %p782_p8 = pnand %p781_p4, %p775_p3 }
  0x48   : > { %785 = shalt.err (!%p782_p8)
}
  0x49   : > { %647 = dma.hbm_to_vmem [thread:$0]  (!%p991_p11), %s989_s8, 128, %s220_s10, %s209_s12  }
  0x4a   : > { %p1098_p10 = scmp.ne.s32.totalorder %s1093_s26, 0 }
  0x4b   : > { %s1012_s13 = sand.u32 (!%p1098_p10), 1, %s846_s19   ;;  %p1099_p4 = scmp.ne.s32.totalorder (!%p1098_p10), %s1091_s24, 0 }
  0x4c   : > { %228 = sbr.rel (%p1098_p10) target bundleno = 503 (0x1f7), region = 40  ;;  %s564_s14 = sshll.u32 (!%p1098_p10), %s1012_s13, 3 }
  0x4d   : > { %s231_s16 = scalar_lea.sflag (!%p1098_p10), [#allocation3], %s1012_s13  ;;  %s234_s17 = scalar_lea.vmem (!%p1098_p10), [#allocation2], %s564_s14 }
  0x51   : > { %829 = dma.done.wait (%p1099_p4), %s231_s16, 128  }
  0x52   : > { %831 = vsyncadd (%p1099_p4), %s231_s16, 4294967168  ;;  %p1100_p8 = scmp.eq.s32.totalorder %s915_s22, 0 }
  0x54   : > { %833 = dma.done.wait (%p1100_p8), [#allocation6], 1280   ;;  %p1101_p3 = pmov %p1100_p8 }
  0x55   : > { %v861_v0 = vmov 0.0   ;;  %vm862_vm0 = vmmov 0   ;;  %v696_v1 = vld [vmem:[#allocation5 + $0x8] sm:$0xff]   ;;  %v697_v2 = vld [vmem:[#allocation5] sm:$0xff]   ;;  %v270_v3 = vld [vmem:[%s234_s17] sm:$0xff]  ;;  %vm295_vm1 = vcmask 261120  }
  0x56   : > { %835 = vsyncadd (%p1101_p3), [#allocation6], 4294966016  ;;  %597 = vmatprep.subr.bf16.mxu0 %v861_v0  ;;  %601 = vmatprep.mubr.msk.bf16.mxu0 %vm862_vm0, %v861_v0  ;;  %v698_v4 = vld [vmem:[#allocation7 + $0x38] sm:$0xff]   ;;  %v271_v5 = vpack.c.bf16 %v270_v3, %v270_v3  ;;  %v699_v6 = vld [vmem:[#allocation7 + $0x30] sm:$0xff]   ;;  %s582_s11 = sshll.u32 %s915_s22, 7  ;;  %s268_s12 = scalar_lea.vmem [#allocation8], %s564_s14 }
  0x57   : > { %605 = vmatprep.subr.bf16.mxu1 %v861_v0  ;;  %621 = vmatprep.mubr.msk.bf16.mxu1 %vm862_vm0, %v861_v0  ;;  %v700_v7 = vld [vmem:[#allocation7 + $0x28] sm:$0xff]   ;;  %v701_v8 = vld [vmem:[#allocation7 + $0x20] sm:$0xff]   ;;  %v702_v9 = vld [vmem:[#allocation7 + $0x18] sm:$0xff]   ;;  %s467_s30 = sshll.u32 %s268_s12, 4  ;;  %s1038_s28 = scalar_lea.hbm %s1086_s5, %s582_s11  ;;  %s1040_s30 = int_to_ptr.vmem [resolvable:$true] %s467_s30 }
  0x58   : > { %598 = vmatpush3.bf16.msra.mxu0 %v696_v1  ;;  %606 = vmatpush3.bf16.msra.mxu1 %v698_v4  ;;  %v703_v10 = vld [vmem:[#allocation7 + $0x10] sm:$0xff]   ;;  %v704_v11 = vld [vmem:[#allocation7 + $0x8] sm:$0xff]   ;;  %v705_v12 = vld [vmem:[#allocation7] sm:$0xff]   ;;  %s454_s7 = scalar_lea.sflag [#allocation4], %s1012_s13  ;;  %s786_s22 = scalar_lea.vmem %s1040_s30, 128 }
  0x59   : > { %599 = vmatprep.subr.bf16.mxu0 %v861_v0  ;;  %607 = vmatprep.subr.bf16.mxu1 %v861_v0  ;;  %v568_v13 = vld [vmem:[%s1083_s2] ss:$0 sm:$0xff]  ;;  %p787_p11 = scmp.ne.s32.totalorder %s1040_s30, %s786_s22  ;;  %p1102_p0 = scmp.ne.s32.totalorder %s1096_s23, 0 }
  0x5a   : > { %v572_v21 = vld [vmem:[%s1085_s4] ss:$0 sm:$0xff]  ;;  %s863_s9 = smov [#allocation8]  }
  0x5b   : > { %p788_p1 = pnand %p787_p11, %p1102_p0  ;;  %s790_s14 = sshll.u32 %s863_s9, 4  ;;  %s791_s14 = int_to_ptr.vmem [resolvable:$false] %s790_s14 }
  0x5c   : > { %600 = vmatpush3.bf16.msra.mxu0 %v697_v2  ;;  %608 = vmatpush3.bf16.msra.mxu1 %v699_v6  ;;  %s792_s16 = scalar_lea.vmem %s791_s14, 256  ;;  %p793_p6 = scmp.lt.s32.totalorder %s1040_s30, %s791_s14 }
  0x5d   : > { %609 = vmatprep.subr.bf16.mxu1 %v861_v0  ;;  %p789_p2 = pneg %p788_p1  ;;  %p794_p12 = scmp.lt.s32.totalorder %s792_s16, %s786_s22 }
  0x5f   : > { %602 = vmatmul.mubr.msk.bf16.vlgmr.msra.gmra.mxu0 %vm295_vm1, %v271_v5  ;;  %p795_p7 = por %p794_p12, %p793_p6 }
  0x60   : > { %610 = vmatpush3.bf16.msra.mxu1 %v700_v7 }
  0x61   : > { %611 = vmatprep.subr.bf16.mxu1 %v861_v0  ;;  %p796_p9 = pnand %p795_p7, %p789_p2 }
  0x64   : > { %612 = vmatpush3.bf16.msra.mxu1 %v701_v8 }
  0x65   : > { %613 = vmatprep.subr.bf16.mxu1 %v861_v0 }
  0x68   : > { %614 = vmatpush3.bf16.msra.mxu1 %v702_v9 }
  0x69   : > { %615 = vmatprep.subr.bf16.mxu1 %v861_v0 }
  0x6c   : > { %616 = vmatpush3.bf16.msra.mxu1 %v703_v10 }
  0x6d   : > { %617 = vmatprep.subr.bf16.mxu1 %v861_v0 }
  0x70   : > { %618 = vmatpush3.bf16.msra.mxu1 %v704_v11 }
  0x71   : > { %619 = vmatprep.subr.bf16.mxu1 %v861_v0 }
  0x74   : > { %620 = vmatpush3.bf16.msra.mxu1 %v705_v12 }
 0x11f   : > { %v333_v14 = vpop.f32.mrf.mxu0 }
 0x120   : > { %v334_v15 = vadd.f32 %v568_v13, %v333_v14 }
 0x121   : > { %v603_v16 = vpop.f32.mrf.mxu0 }
 0x122   : > { %v339_v17 = vmax.f32 %v334_v15, 0.0 }
 0x123   : > { %v336_v18 = vpop.f32.mrf.mxu0 }
 0x124   : > { %v340_v19 = vpack.c.bf16 %v339_v17, %v339_v17 }
 0x125   : > { %v604_v20 = vpop.f32.mrf.mxu0 }
 0x126   : > { %622 = vmatmul.mubr.bf16.vlgmr.msra.gmra.mxu1 %v340_v19 }
 0x1e6   : > { %v446_v22 = vpop.f32.mrf.mxu1 }
 0x1e7   : > { %v447_v23 = vadd.f32 %v572_v21, %v446_v22 }
 0x1e8   : > { %v623_v24 = vpop.f32.mrf.mxu1 }
 0x1e9   : > { %452 = vst [vmem:[%s268_s12] sm:$0xff] %v447_v23 }
 0x1ea   : > { %v449_v25 = vpop.f32.mrf.mxu1 }
 0x1eb   : > { %799 = shalt.err (!%p796_p9)
}
 0x1ec   : > { %s800_s17 = scalar_lea.hbm %s1038_s28, 128  ;;  %s804_s26 = scalar_lea.hbm %s1086_s5, 256 }
 0x1ed   : > { %p801_p13 = scmp.ne.s32.totalorder %s1038_s28, %s800_s17  ;;  %p805_p4 = scmp.lt.s32.totalorder %s1038_s28, %s1086_s5 }
 0x1ee   : > { %p806_p8 = scmp.lt.s32.totalorder %s804_s26, %s800_s17 }
 0x1ef   : > { %p802_p5 = pnand %p801_p13, %p1102_p0 }
 0x1f0   : > { %p807_p3 = por %p806_p8, %p805_p4 }
 0x1f1   : > { %p803_p10 = pneg %p802_p5 }
 0x1f3   : > { %p808_p11 = pnand %p807_p3, %p803_p10 }
 0x1f5   : > { %811 = shalt.err (!%p808_p11)
}
 0x1f6   : > { %635 = dma.vmem_to_hbm [thread:$0]  (%p1102_p0), %s1040_s30, 128, %s1038_s28, %s454_s7   ;;  %v624_v26 = vpop.f32.mrf.mxu1 }
 0x1f7 PF: > { %s479_s11 = sand.u32 1, %s842_s18   ;;  %p1103_p1 = scmp.ne.s32.totalorder %s1092_s25, 0 }
 0x1f8   : > { %p1104_p2 = scmp.ge.s32.totalorder %s854_s21, 2  ;;  %s480_s12 = scalar_lea.sflag [#allocation4], %s479_s11 }
 0x1fa   : > { %p649_p6 = pnand %p1104_p2, %p1103_p1 }
 0x1fc   : > { %p650_p12 = pneg %p649_p6 }
 0x1fe   : > { %837 = dma.done.wait (%p650_p12), %s480_s12, 128  }
 0x1ff   : > { %839 = vsyncadd (%p650_p12), %s480_s12, 4294967168  ;;  %p19_p7 = scmp.ge.s32.totalorder %s966_s15, 4   ;;  %s1105_s18 = smov %s846_s19 }
 0x200   : > { %s1106_s19 = smov %s850_s20  ;;  %s1107_s20 = smov %s982_s27 }
 0x201   : > { %s1108_s21 = smov %s966_s15  ;;  %21 = sbr.rel (!%p19_p7) target bundleno = 6 (0x6), region = 93 }
 0x206   :  { %485 = vsyncpa [#allocation3], 1 }
 0x207   :  { %487 = vsyncpa [#allocation3 + $0x1], 1 }
 0x208   :  { %488 = vsyncpa [#allocation6], 1 }
 0x209   :  { %489 = vsyncpa [#allocation4], 1 }
 0x20a   :  { %491 = vsyncpa [#allocation4 + $0x1], 1 }

</bundles_post_ra>
